<compile_context>
chip_gen: v5e
topology: v5e:2x2
jax: 0.10.0
libtpu: 0.0.40
codegen_flags: <defaults>
</compile_context>

<pallas_src>
import math

import jax
import jax.numpy as jnp
from jax.experimental import pallas as pl
from jax.experimental.pallas import tpu as pltpu


def _filter_matmul_kernel(a_ref, x_ref, o_ref):
    # a_ref: (H, H)  fused Fourier-filter matrix (constant across the grid)
    # x_ref: (H, TN) lane-dense slab of columns of x
    # o_ref: (H, TN)
    o_ref[...] = jnp.dot(
        a_ref[...], x_ref[...], preferred_element_type=jnp.float32
    ).astype(o_ref.dtype)


def _build_filter_matrix(filt, H):
    """A = (1/H) * (C @ diag(f) @ C + S @ diag(f) @ S), with C/S the DFT cos/sin bases."""
    n = jnp.arange(H, dtype=jnp.float32)
    theta = (2.0 * math.pi / H) * jnp.outer(n, n)
    cos_m = jnp.cos(theta)
    sin_m = jnp.sin(theta)
    f_col = filt.reshape(H, 1).astype(jnp.float32)   # diag(f) applied as row scaling
    hp = jax.lax.Precision.HIGHEST                   # one-time precompute, keep accurate
    a = (jnp.dot(cos_m, f_col * cos_m, precision=hp) +
         jnp.dot(sin_m, f_col * sin_m, precision=hp)) * (1.0 / H)
    return a.astype(jnp.float32)


def learnable_filter_forward(x, filt):
    """x: [B, C, H, W] float32, filt: [H, 1] float32 (learnable parameter)."""
    B, C, H, W = x.shape
    assert filt.shape == (H, 1)

    a_mat = _build_filter_matrix(filt, H)

    # Lane-dense layout: contraction axis H leads, B*C*W fused into lanes.
    N = B * C * W
    x2d = jnp.transpose(x, (2, 0, 1, 3)).reshape(H, N)

    LANE = 128
    # Largest lane tile: multiple of 128, <= 2048, <= padded N, and such that
    # the double-buffered in+out tiles plus A stay well inside ~24 MiB VMEM.
    vmem_budget_elems = (24 * 1024 * 1024) // 4
    tn_vmem_cap = max(LANE, ((vmem_budget_elems - 2 * H * H) // (4 * H)) // LANE * LANE)
    TN = int(min(2048, tn_vmem_cap, pl.cdiv(N, LANE) * LANE))
    N_pad = int(pl.cdiv(N, TN) * TN)
    if N_pad != N:
        x2d = jnp.pad(x2d, ((0, 0), (0, N_pad - N)))

    grid = (N_pad // TN,)

    cost = pl.CostEstimate(
        flops=2 * H * H * N_pad,
        transcendentals=0,
        bytes_accessed=4 * (H * H + 2 * H * N_pad),
    )

    out2d = pl.pallas_call(
        _filter_matmul_kernel,
        out_shape=jax.ShapeDtypeStruct((H, N_pad), x.dtype),
        grid=grid,
        in_specs=[
            pl.BlockSpec((H, H), lambda j: (0, 0)),    # fused filter matrix (constant)
            pl.BlockSpec((H, TN), lambda j: (0, j)),   # lane tile of x
        ],
        out_specs=pl.BlockSpec((H, TN), lambda j: (0, j)),
        compiler_params=pltpu.CompilerParams(
            dimension_semantics=("parallel",),
            vmem_limit_bytes=32 * 1024 * 1024,
        ),
        cost_estimate=cost,
    )(a_mat, x2d)

    y = out2d[:, :N].reshape(H, B, C, W)
    return jnp.transpose(y, (1, 2, 0, 3))


def _reference_forward(x, filt):
    # Pure-JAX reference: Re( IFFT_H( filt * FFT_H(x) ) )
    X = jnp.fft.fft(x.astype(jnp.complex64), axis=2)
    X = X * filt[None, None, :, 0][..., None]   # broadcast filt over B, C, W
    y = jnp.fft.ifft(X, axis=2)
    return jnp.real(y).astype(x.dtype)


if __name__ == "__main__":
    B, C, H, W = 2, 4, 16, 16
    key = jax.random.PRNGKey(0)
    x = jax.random.normal(key, (B, C, H, W), dtype=jnp.float32)

    # Deterministic parameter init as in LearnableFilter.__init__:
    # filter = 2 * |fftfreq(filter_size)| viewed as (H, 1).
    filt = (2.0 * jnp.abs(jnp.fft.fftfreq(H))).astype(jnp.float32).reshape(H, 1)

    y = learnable_filter_forward(x, filt)
    y = jax.block_until_ready(y)

    y_ref = _reference_forward(x, filt)
    assert y.shape == (B, C, H, W)
    assert jnp.allclose(y, y_ref, atol=1e-4, rtol=1e-4)

    print("KERNEL_OK")
</pallas_src>

<mosaic_0001>
module attributes {stable_mosaic.version = 11 : i64} {
  func.func @_filter_matmul_kernel(%arg0: i32, %arg1: memref<16x16xf32, #tpu.memory_space<vmem>>, %arg2: memref<16x128xf32, #tpu.memory_space<vmem>>, %arg3: memref<16x128xf32, #tpu.memory_space<vmem>>) attributes {dimension_semantics = [#tpu.dimension_semantics<parallel>], iteration_bounds = array<i64: 1>, scalar_prefetch = 0 : i64, scratch_operands = 0 : i64, tpu.core_type = #tpu.core_type<tc>, window_params = [{pipeline_mode = #tpu.pipeline_mode<synchronous>, transform_indices = @transform_0, window_bounds = array<i64: 16, 16>}, {transform_indices = @transform_1, window_bounds = array<i64: 16, 128>}, {transform_indices = @transform_2, window_bounds = array<i64: 16, 128>}]} {
    %c0 = arith.constant 0 : index
    %c0_0 = arith.constant 0 : index
    %0 = vector.load %arg1[%c0, %c0_0] : memref<16x16xf32, #tpu.memory_space<vmem>>, vector<16x16xf32>
    %c0_1 = arith.constant 0 : index
    %c0_2 = arith.constant 0 : index
    %1 = vector.load %arg2[%c0_1, %c0_2] : memref<16x128xf32, #tpu.memory_space<vmem>>, vector<16x128xf32>
    %cst = arith.constant dense<0.000000e+00> : vector<16x128xf32>
    %2 = tpu.matmul %0, %1, %cst {dimension_numbers = #tpu.dot_dimension_numbers<[1], [0], [0], [1], [0, 0, 1, 1], [], []>} : vector<16x16xf32>, vector<16x128xf32>, vector<16x128xf32> -> vector<16x128xf32>
    %c0_3 = arith.constant 0 : index
    %c0_4 = arith.constant 0 : index
    %3 = vector.load %arg3[%c0_3, %c0_4] : memref<16x128xf32, #tpu.memory_space<vmem>>, vector<16x128xf32>
    tpu.vector_store %arg3[%c0_3, %c0_4], %2 {strides = array<i32>} : memref<16x128xf32, #tpu.memory_space<vmem>>, vector<16x128xf32>,
    return
  }
  func.func @transform_0(%arg0: i32) -> (i32, i32) {
    %c0_i32 = arith.constant 0 : i32
    %c0_i32_0 = arith.constant 0 : i32
    %c0_i32_1 = arith.constant 0 : i32
    return %c0_i32, %c0_i32_0 : i32, i32
  }
  func.func @transform_1(%arg0: i32) -> (i32, i32) {
    %c0_i32 = arith.constant 0 : i32
    %c0_i32_0 = arith.constant 0 : i32
    return %c0_i32, %arg0 : i32, i32
  }
  func.func @transform_2(%arg0: i32) -> (i32, i32) {
    %c0_i32 = arith.constant 0 : i32
    %c0_i32_0 = arith.constant 0 : i32
    return %c0_i32, %arg0 : i32, i32
  }
}

</mosaic_0001>

<bundles_post_ra>
// kernel: tpu_custom_call.1
= control target key start
LH: loop header
LB: loop body
LE: loop exit
PB: predicated region body
PF: predicated region fallthrough
CT: control target
= control target key end

     0   :  { %7 = vsyncpa [#allocation3], 0  ;;  %s225_s0 = inlined_call_operand.hbm [shape: f32[16,16], index: 0, kind: input, shape index: {}]   ;;  %s226_s1 = inlined_call_operand.hbm [shape: f32[16,128], index: 1, kind: input, shape index: {}]   ;;  %s227_s2 = inlined_call_operand.hbm [shape: f32[16,128], index: 2, kind: output, shape index: {}]  }
   0x1   :  { %8 = vsyncpa [#allocation6], 0 }
   0x2   :  { %9 = vsyncpa [#allocation4], 0  ;;  %s14_s11 = sshll.u32 %s225_s0, 4  ;;  %s187_s12 = smov [#allocation2]   ;;  %s15_s11 = int_to_ptr.hbm [resolvable:$true] %s14_s11 }
   0x3   :  { %s16_s13 = sshll.u32 %s187_s12, 4  ;;  %s27_s16 = sshll.u32 %s226_s1, 4  ;;  %s17_s13 = int_to_ptr.vmem [resolvable:$true] %s16_s13  ;;  %s28_s16 = int_to_ptr.hbm [resolvable:$true] %s27_s16 }
   0x4   :  { %s188_s17 = smov 128   ;;  %s189_s18 = smov 8  }
   0x5   :  { %22 = dma.hbm_to_vmem [thread:$0]  %s15_s11, 256, %s17_s13, [#allocation3], %s188_s17, %s188_s17, %s189_s18  }
   0x6   :  { %s190_s19 = smov [#allocation5]  }
   0x7   :  { %s29_s20 = sshll.u32 %s190_s19, 4  ;;  %s30_s20 = int_to_ptr.vmem [resolvable:$true] %s29_s20 }
   0x8   :  { %35 = dma.hbm_to_vmem [thread:$0]  %s28_s16, 256, %s30_s20, [#allocation6], %s188_s17, %s188_s17, %s189_s18  }
   0x9   :  { %181 = dma.done.wait [#allocation3], 256  }
   0xa   :  { %182 = vsyncadd [#allocation3], 4294967040 }
   0xb   :  { %183 = dma.done.wait [#allocation6], 256  }
   0xc   :  { %184 = vsyncadd [#allocation6], 4294967040  ;;  %v47_v0 = vld [vmem:[#allocation5 + $0x8] sm:$0xff]  ;;  %v46_v1 = vld [vmem:[#allocation5] sm:$0xff]  ;;  %vm48_vm0 = vcmask 130048   ;;  %s191_s0 = smov [#allocation7]  }
   0xd   :  { %69 = vmatpush.msra.mxu0 %v47_v0  ;;  %102 = vmatpush.msra.mxu1 %v47_v0  ;;  %v44_v2 = vld [vmem:[#allocation2] sm:$0xff]  ;;  %v45_v3 = vld [vmem:[#allocation2 + $0x8] sm:$0xff]  ;;  %s84_s1 = sshll.u32 %s191_s0, 4  ;;  %s86_s23 = sshll.u32 %s227_s2, 4  ;;  %s85_s1 = int_to_ptr.vmem [resolvable:$true] %s84_s1  ;;  %s87_s23 = int_to_ptr.hbm [resolvable:$true] %s86_s23 }
   0xf   :  { %70 = vmatpush.msra.mxu0 %v46_v1  ;;  %103 = vmatpush.msra.mxu1 %v46_v1 }
  0x10   :  { %100 = vmatmul.msk.f32.vlgmr.msra.gmra.mxu0 %vm48_vm0, %v44_v2  ;;  %101 = vmatmul.msk.f32.vlgmr.msra.gmra.mxu1 %vm48_vm0, %v45_v3 }
  0x8d   :  { %v72_v4 = vpop.f32.mrf.mxu0  ;;  %v75_v5 = vpop.f32.mrf.mxu1 }
  0x8e   :  { %78 = vst [vmem:[#allocation7] sm:$0xff] %v72_v4 }
  0x8f   :  { %79 = vst [vmem:[#allocation7 + $0x8] sm:$0xff] %v75_v5 }
  0x90   :  { %92 = dma.vmem_to_hbm [thread:$0]  %s85_s1, 256, %s87_s23, [#allocation4], %s188_s17, %s188_s17, %s189_s18  }
  0x91   :  { %185 = dma.done.wait [#allocation4], 256  }
  0x92   :  { %186 = vsyncadd [#allocation4], 4294967040 }
  0x93   :  { %97 = vsyncpa [#allocation3], 1 }
  0x94   :  { %98 = vsyncpa [#allocation6], 1 }
  0x95   :  { %99 = vsyncpa [#allocation4], 1 }

</bundles_post_ra>
